<compile_context>
chip_gen: v5e
topology: v5e:2x2
jax: 0.10.0
libtpu: 0.0.40
codegen_flags: <defaults>
</compile_context>

<pallas_src>
import jax
import jax.numpy as jnp
from jax import lax
from jax.experimental import pallas as pl
from jax.experimental.pallas import tpu as pltpu
import numpy as np


def _convert_kernel(boxes_ref, sc_ref, flat_ref):
    # boxes_ref : VMEM (BB, 4, MT) f32  channels-first boxes (x1, y1, x2, y2) -> out rows 0-3
    # sc_ref    : VMEM (BB, 2, MT) f32  row 0 = scores, row 1 = classes (pre-cast) -> out rows 4-5
    # flat_ref  : VMEM (BB, 8, MT) f32  rows: 0-3 boxes, 4 score, 5 class, 6 img_idx, 7 pad
    bb, _, mt = sc_ref.shape
    base = pl.program_id(0) * bb                       # first batch index handled by this block

    # Sublane-aligned copies (input sublanes 0-3 -> output sublanes 0-3: no cross-sublane shift).
    flat_ref[:, 0:4, :] = boxes_ref[...]
    flat_ref[:, 4:6, :] = sc_ref[...]
    # Row 6: image index via a broadcasted iota over the within-block batch dim.
    img = (lax.broadcasted_iota(jnp.int32, (bb, 1, mt), 0) + base).astype(jnp.float32)
    flat_ref[:, 6:7, :] = img
    # Row 7 intentionally left unwritten: it is a pad row the wrapper never reads back.


@jax.jit
def convert_trt_format_to_flat_tensor(num_predictions, pred_boxes, pred_scores, pred_classes):
    """
    :param num_predictions: [B, 1] int32
    :param pred_boxes:      [B, M, 4] float32
    :param pred_scores:     [B, M]    float32
    :param pred_classes:    [B, M]    int32
    :return: (flat_compacted [B*M, 7] float32, n_valid int32)
             The first n_valid rows are [image_index, x1, y1, x2, y2, score, class] in the
             same order as the PyTorch module; rows beyond n_valid are zeros.
    """
    B, M, _ = pred_boxes.shape

    # Lane tiling: round M up to a multiple of 128, cap the lane tile at 2048 and round
    # Mp up to a multiple of the tile so the lane grid divides exactly.
    M128 = ((M + 127) // 128) * 128
    MT = min(M128, 2048)
    Mp = ((M + MT - 1) // MT) * MT
    pad = Mp - M

    # Batch tiling: ~<=2 MiB per block (14 f32 rows of MT lanes per batch element), but at
    # least ~8 batch tiles when B allows so both v7x cores keep several pipelined steps.
    bytes_per_b = (4 + 2 + 8) * MT * 4
    cap_b = max(1, (2 * 1024 * 1024) // bytes_per_b)
    BB = max(1, min(cap_b, -(-B // 8)))
    grid = (pl.cdiv(B, BB), Mp // MT)

    # Wrapper-side relayouts feeding the kernel (each a single fused XLA copy):
    #   boxes:          cast + transpose to channels-first + lane pad -> (B, 4, Mp)
    #   scores/classes: cast + stack channels-first + lane pad        -> (B, 2, Mp)
    # TODO(synk): evaluate feeding pred_boxes as a flat (B, 1, 4*M) view and de-interleaving
    # in-kernel with stride-4 lane slices to drop this extra HBM pass (needs lowering check).
    boxes_cf = jnp.pad(jnp.transpose(pred_boxes.astype(jnp.float32), (0, 2, 1)),
                       ((0, 0), (0, 0), (0, pad)))                                   # [B, 4, Mp]
    sc = jnp.pad(jnp.stack([pred_scores.astype(jnp.float32),
                            pred_classes.astype(jnp.float32)], axis=1),
                 ((0, 0), (0, 0), (0, pad)))                                          # [B, 2, Mp]

    flat_b8m = pl.pallas_call(
        _convert_kernel,
        grid=grid,
        in_specs=[
            pl.BlockSpec((BB, 4, MT), lambda i, j: (i, 0, j)),
            pl.BlockSpec((BB, 2, MT), lambda i, j: (i, 0, j)),
        ],
        out_specs=pl.BlockSpec((BB, 8, MT), lambda i, j: (i, 0, j)),
        out_shape=jax.ShapeDtypeStruct((B, 8, Mp), jnp.float32),
        compiler_params=pltpu.CompilerParams(
            dimension_semantics=("parallel", "parallel")),
    )(boxes_cf, sc)

    # TODO(synk): a dynamic-shape output (flat[mask]) is not expressible in Pallas/XLA;
    # return a fixed-size buffer whose first n_valid rows are the result instead.
    #
    # Row compaction + relayout as ONE vectorized gather (no serial per-batch loop).
    # Output row r belongs to image b with offsets[b] <= r < cum[b]; column c reads
    # channel perm[c] so each row is [img_idx, x1, y1, x2, y2, score, class].
    n_per = jnp.clip(num_predictions.reshape(B).astype(jnp.int32), 0, M)
    cum = jnp.cumsum(n_per)
    offsets = cum - n_per
    n_valid = cum[B - 1].astype(jnp.int32)

    r = jnp.arange(B * M, dtype=jnp.int32)
    b_idx = jnp.minimum(jnp.searchsorted(cum, r, side="right").astype(jnp.int32), B - 1)
    p_idx = jnp.clip(r - offsets[b_idx], 0, M - 1)
    perm = jnp.array([6, 0, 1, 2, 3, 4, 5], jnp.int32)

    gathered = flat_b8m[b_idx[:, None], perm[None, :], p_idx[:, None]]        # (B*M, 7)
    flat_compacted = jnp.where((r < n_valid)[:, None], gathered, 0.0)
    return flat_compacted, n_valid


def _numpy_reference(num_predictions, pred_boxes, pred_scores, pred_classes):
    B, M, _ = pred_boxes.shape
    batch_idx = np.repeat(np.arange(B).reshape(-1, 1), M, axis=1).astype(np.float32)
    flat = np.concatenate(
        [
            batch_idx[..., None],
            pred_boxes.astype(np.float32),
            pred_scores.astype(np.float32)[..., None],
            pred_classes.astype(np.float32)[..., None],
        ],
        axis=-1,
    ).reshape(B * M, 7)
    pred_idx = np.arange(M).reshape(1, -1)
    mask = (pred_idx < num_predictions.reshape(B, 1)).reshape(-1)
    return flat[mask]


if __name__ == "__main__":
    B = 2
    M = 16  # max_predictions_per_image

    key = jax.random.PRNGKey(0)
    k1, k2, k3, k4 = jax.random.split(key, 4)

    num_predictions = jax.random.randint(k1, (B, 1), minval=1, maxval=M + 1, dtype=jnp.int32)
    pred_boxes = jax.random.uniform(k2, (B, M, 4), dtype=jnp.float32) * 100.0
    pred_scores = jax.random.uniform(k3, (B, M), dtype=jnp.float32)
    pred_classes = jax.random.randint(k4, (B, M), minval=0, maxval=80, dtype=jnp.int32)

    flat_compacted, n_valid = convert_trt_format_to_flat_tensor(
        num_predictions, pred_boxes, pred_scores, pred_classes
    )
    jax.block_until_ready((flat_compacted, n_valid))

    ref = _numpy_reference(
        np.asarray(num_predictions),
        np.asarray(pred_boxes),
        np.asarray(pred_scores),
        np.asarray(pred_classes),
    )
    n = int(n_valid)
    assert n == ref.shape[0], f"count mismatch: {n} vs {ref.shape[0]}"
    np.testing.assert_allclose(np.asarray(flat_compacted)[:n], ref, rtol=1e-6, atol=1e-6)
    assert not np.any(np.asarray(flat_compacted)[n:]), "tail rows beyond n_valid must be zeros"

    print("KERNEL_OK")
</pallas_src>

<mosaic_0001>
module attributes {stable_mosaic.version = 11 : i64} {
  func.func @_convert_kernel(%arg0: i32, %arg1: i32, %arg2: memref<1x4x128xf32, #tpu.memory_space<vmem>>, %arg3: memref<1x2x128xf32, #tpu.memory_space<vmem>>, %arg4: memref<1x8x128xf32, #tpu.memory_space<vmem>>) attributes {dimension_semantics = [#tpu.dimension_semantics<parallel>, #tpu.dimension_semantics<parallel>], iteration_bounds = array<i64: 2, 1>, scalar_prefetch = 0 : i64, scratch_operands = 0 : i64, tpu.core_type = #tpu.core_type<tc>, window_params = [{transform_indices = @transform_0, window_bounds = array<i64: 1, 4, 128>}, {transform_indices = @transform_1, window_bounds = array<i64: 1, 2, 128>}, {transform_indices = @transform_2, window_bounds = array<i64: 1, 8, 128>}]} {
    %c1_i32 = arith.constant 1 : i32
    %0 = arith.muli %arg0, %c1_i32 : i32
    %c0 = arith.constant 0 : index
    %c0_0 = arith.constant 0 : index
    %c0_1 = arith.constant 0 : index
    %1 = vector.load %arg2[%c0, %c0_0, %c0_1] : memref<1x4x128xf32, #tpu.memory_space<vmem>>, vector<1x4x128xf32>
    %c0_2 = arith.constant 0 : index
    %c0_3 = arith.constant 0 : index
    %c0_4 = arith.constant 0 : index
    %2 = vector.load %arg4[%c0_2, %c0_3, %c0_4] : memref<1x8x128xf32, #tpu.memory_space<vmem>>, vector<1x4x128xf32>
    tpu.vector_store %arg4[%c0_2, %c0_3, %c0_4], %1 {strides = array<i32>} : memref<1x8x128xf32, #tpu.memory_space<vmem>>, vector<1x4x128xf32>,
    %c0_5 = arith.constant 0 : index
    %c0_6 = arith.constant 0 : index
    %c0_7 = arith.constant 0 : index
    %3 = vector.load %arg3[%c0_5, %c0_6, %c0_7] : memref<1x2x128xf32, #tpu.memory_space<vmem>>, vector<1x2x128xf32>
    %c0_8 = arith.constant 0 : index
    %c4 = arith.constant 4 : index
    %c0_9 = arith.constant 0 : index
    %4 = vector.load %arg4[%c0_8, %c4, %c0_9] : memref<1x8x128xf32, #tpu.memory_space<vmem>>, vector<1x2x128xf32>
    tpu.vector_store %arg4[%c0_8, %c4, %c0_9], %3 {strides = array<i32>} : memref<1x8x128xf32, #tpu.memory_space<vmem>>, vector<1x2x128xf32>,
    %5 = tpu.iota {dimensions = array<i32: 0>} : vector<1x1x128xi32>
    %6 = vector.broadcast %0 : i32 to vector<1x1x128xi32>
    %7 = arith.addi %5, %6 : vector<1x1x128xi32>
    %8 = arith.sitofp %7 : vector<1x1x128xi32> to vector<1x1x128xf32>
    %c0_10 = arith.constant 0 : index
    %c6 = arith.constant 6 : index
    %c0_11 = arith.constant 0 : index
    %9 = vector.load %arg4[%c0_10, %c6, %c0_11] : memref<1x8x128xf32, #tpu.memory_space<vmem>>, vector<1x1x128xf32>
    tpu.vector_store %arg4[%c0_10, %c6, %c0_11], %8 {strides = array<i32>} : memref<1x8x128xf32, #tpu.memory_space<vmem>>, vector<1x1x128xf32>,
    return
  }
  func.func @transform_0(%arg0: i32, %arg1: i32) -> (i32, i32, i32) {
    %c0_i32 = arith.constant 0 : i32
    %c0_i32_0 = arith.constant 0 : i32
    return %arg0, %c0_i32, %arg1 : i32, i32, i32
  }
  func.func @transform_1(%arg0: i32, %arg1: i32) -> (i32, i32, i32) {
    %c0_i32 = arith.constant 0 : i32
    %c0_i32_0 = arith.constant 0 : i32
    return %arg0, %c0_i32, %arg1 : i32, i32, i32
  }
  func.func @transform_2(%arg0: i32, %arg1: i32) -> (i32, i32, i32) {
    %c0_i32 = arith.constant 0 : i32
    %c0_i32_0 = arith.constant 0 : i32
    return %arg0, %c0_i32, %arg1 : i32, i32, i32
  }
}

</mosaic_0001>

<bundles_post_ra>
// kernel: custom-call.2
= control target key start
LH: loop header
LB: loop body
LE: loop exit
PB: predicated region body
PF: predicated region fallthrough
CT: control target
= control target key end

     0   :  { %s6_s0 = inlined_call_operand.vmem [shape: u32[32], index: 0, kind: output, shape index: {}]  }

</bundles_post_ra>
